<compile_context>
chip_gen: v7x
topology: tpu7x:2x2x1
jax: 0.10.0
libtpu: 0.0.40
codegen_flags: <defaults>
</compile_context>

<pallas_src>
import functools

import jax
import jax.numpy as jnp
from jax.experimental import pallas as pl
from jax.experimental.pallas import tpu as pltpu

ALPHA = 0.5
GAMMA = 1.5

_TILE_ELEMS_CAP = 2 * 1024 * 1024      # ~8 MiB f32 / 4 MiB bf16 of logits per buffer
_VMEM_HEADROOM = 16 * 1024 * 1024      # targets + accumulator + Mosaic internal scratch
_F32_TEMPS = 6                         # conservative count of live (tile_n, C) f32 temps


def _device_vmem_bytes():
    try:
        return int(pltpu.get_tpu_info().vmem_capacity_bytes)
    except Exception:
        return 64 * 1024 * 1024        # conservative fallback: v7x per-TensorCore VMEM


def _choose_tile_n(n, c, itemsize, sublane, vmem_cap):
    """Largest batch tile whose logits slab + f32 temporaries fit the VMEM budget."""
    bytes_per_row = c * (2 * itemsize + _F32_TEMPS * 4)   # double-buffered input + temps
    budget = max(vmem_cap - _VMEM_HEADROOM, 8 * 1024 * 1024)
    rows = budget // bytes_per_row
    rows = min(rows, _TILE_ELEMS_CAP // max(1, c))        # ~6-8 MiB/buffer is enough
    rows = max(sublane, (rows // sublane) * sublane)
    return n if rows >= n else rows


def _focal_loss_kernel(t_ref, x_ref, o_ref, acc_ref, *, tile_n, n_rows):
    # t_ref  : (tile_n, 1) int32 targets block
    # x_ref  : (tile_n, C) logits block (f32 or bf16)
    # o_ref  : (8, 128) f32 per-shard partial-CE-sum block (broadcast-filled)
    # acc_ref: (tile_n, 1) f32 running per-row CE accumulator (VMEM scratch)
    i = pl.program_id(1)
    n_steps = pl.num_programs(1)

    @pl.when(i == 0)
    def _():
        acc_ref[...] = jnp.zeros_like(acc_ref)

    x = x_ref[...].astype(jnp.float32)                          # (tile_n, C)
    tgt = t_ref[...]                                            # (tile_n, 1)

    # Global row ids of this (possibly clamped / tail) block; rows >= N are
    # masked so padded and redundant blocks contribute exactly zero.
    step = pl.program_id(0) * n_steps + i                       # unclamped step id
    rows = step * tile_n + jax.lax.broadcasted_iota(jnp.int32, (tile_n, 1), 0)
    valid = rows < n_rows

    # Stable per-row cross-entropy, reusing (x - m) for both LSE and the gather:
    #   ce = log(sum(exp(x - m))) - (x[target] - m)
    m = jnp.max(x, axis=1, keepdims=True)
    xm = x - m
    lse = jnp.log(jnp.sum(jnp.exp(xm), axis=1, keepdims=True))
    cls = jax.lax.broadcasted_iota(jnp.int32, x.shape, 1)
    tgt_xm = jnp.sum(jnp.where(cls == tgt, xm, 0.0), axis=1, keepdims=True)
    ce_rows = lse - tgt_xm

    acc_ref[...] += jnp.where(valid, ce_rows, 0.0)

    @pl.when(i == n_steps - 1)
    def _():
        o_ref[...] = jnp.full(o_ref.shape, jnp.sum(acc_ref[...]), o_ref.dtype)


def focal_loss(logits, targets, *, alpha=ALPHA, gamma=GAMMA, tile_n=None):
    """logits: (N, C) f32/bf16, targets: (N,) int class ids -> scalar f32 focal loss."""
    n, c = logits.shape
    itemsize = jnp.dtype(logits.dtype).itemsize
    sublane = max(8, 32 // itemsize)            # 8 for f32, 16 for bf16, 32 for int8
    vmem_cap = _device_vmem_bytes()

    if tile_n is None:
        tile_n = _choose_tile_n(n, c, itemsize, sublane, vmem_cap)
    elif tile_n < n:
        tile_n = max(sublane, (tile_n // sublane) * sublane)
    else:
        tile_n = n

    total_steps = pl.cdiv(n, tile_n)
    num_par = 2 if total_steps >= 2 else 1      # feed both TensorCores on v7x
    steps_per_par = pl.cdiv(total_steps, num_par)
    last_blk = total_steps - 1

    targets2d = targets.astype(jnp.int32).reshape(n, 1)

    # Clamp so no block starts past the array end; redundant (clamped) steps are
    # zeroed in-kernel by the row mask.
    def _blk(p, i):
        return jnp.minimum(p * steps_per_par + i, last_blk)

    # VMEM budget: double-buffered logits tile + materialized f32 temporaries +
    # targets/accumulator padding + misc headroom, capped below physical VMEM.
    tile_elems = tile_n * c
    need = (2 * tile_elems * itemsize
            + _F32_TEMPS * tile_elems * 4
            + 3 * (-(-tile_n // 8) * 8) * 128 * 4
            + 8 * 1024 * 1024)
    vmem_limit = int(min(max(need, 32 * 1024 * 1024),
                         max(vmem_cap - 2 * 1024 * 1024, 32 * 1024 * 1024)))

    cost = pl.CostEstimate(
        flops=6 * n * c,
        transcendentals=n * c + n,
        bytes_accessed=n * c * itemsize + n * 4 + num_par * 8 * 128 * 4,
    )

    kernel = functools.partial(_focal_loss_kernel, tile_n=tile_n, n_rows=n)

    partials = pl.pallas_call(
        kernel,
        out_shape=jax.ShapeDtypeStruct((num_par * 8, 128), jnp.float32),
        grid_spec=pltpu.PrefetchScalarGridSpec(
            num_scalar_prefetch=0,
            grid=(num_par, steps_per_par),
            in_specs=[
                pl.BlockSpec((tile_n, 1), lambda p, i: (_blk(p, i), 0)),   # targets
                pl.BlockSpec((tile_n, c), lambda p, i: (_blk(p, i), 0)),   # logits
            ],
            out_specs=pl.BlockSpec((8, 128), lambda p, i: (p, 0)),
            scratch_shapes=[pltpu.VMEM((tile_n, 1), jnp.float32)],
        ),
        compiler_params=pltpu.CompilerParams(
            dimension_semantics=("parallel", "arbitrary"),
            vmem_limit_bytes=vmem_limit,
        ),
        cost_estimate=cost,
    )(targets2d, logits)

    # Tiny scalar finalize on the combined sum (reduction='mean' + focal transform).
    ce = jnp.sum(partials[::8, 0]) / jnp.float32(n)
    pt = jnp.exp(-ce)
    base = jnp.maximum(1.0 - pt, 0.0)           # guard pt > 1 from float rounding
    return jnp.float32(alpha) * base ** jnp.float32(gamma) * ce


def _focal_loss_ref(logits, targets, alpha=ALPHA, gamma=GAMMA):
    logp = jax.nn.log_softmax(logits.astype(jnp.float32), axis=-1)
    ce = -jnp.mean(jnp.take_along_axis(logp, targets[:, None].astype(jnp.int32), axis=1))
    pt = jnp.exp(-ce)
    return alpha * jnp.maximum(1.0 - pt, 0.0) ** gamma * ce


if __name__ == "__main__":
    key = jax.random.PRNGKey(0)
    k1, k2, k3, k4 = jax.random.split(key, 4)

    # Small case consistent with the module: a batch of class logits + class ids.
    N, C = 16, 32
    logits = jax.random.normal(k1, (N, C), dtype=jnp.float32)
    targets = jax.random.randint(k2, (N,), 0, C, dtype=jnp.int32)
    loss = jax.jit(focal_loss)(logits, targets)
    jax.block_until_ready(loss)
    ref = _focal_loss_ref(logits, targets)
    assert jnp.allclose(loss, ref, rtol=1e-4, atol=1e-6), (loss, ref)

    # Ragged multi-step case: cdiv grid (5 blocks of 64 rows for N=300), masked
    # tail rows, 2-way shard split with one clamped redundant step.
    N2, C2 = 300, 128
    logits2 = jax.random.normal(k3, (N2, C2), dtype=jnp.float32)
    targets2 = jax.random.randint(k4, (N2,), 0, C2, dtype=jnp.int32)
    loss2 = jax.jit(functools.partial(focal_loss, tile_n=64))(logits2, targets2)
    jax.block_until_ready(loss2)
    ref2 = _focal_loss_ref(logits2, targets2)
    assert jnp.allclose(loss2, ref2, rtol=1e-4, atol=1e-6), (loss2, ref2)

    print("KERNEL_OK")
</pallas_src>

<mosaic_0001>
module attributes {stable_mosaic.version = 11 : i64} {
  func.func @_focal_loss_kernel(%arg0: i32, %arg1: i32, %arg2: memref<16x1xi32, #tpu.memory_space<vmem>>, %arg3: memref<16x32xf32, #tpu.memory_space<vmem>>, %arg4: memref<8x128xf32, #tpu.memory_space<vmem>>, %arg5: memref<16x1xf32, #tpu.memory_space<vmem>>) attributes {dimension_semantics = [#tpu.dimension_semantics<parallel>, #tpu.dimension_semantics<arbitrary>], iteration_bounds = array<i64: 1, 1>, scalar_prefetch = 0 : i64, scratch_operands = 1 : i64, tpu.core_type = #tpu.core_type<tc>, window_params = [{transform_indices = @transform_0, window_bounds = array<i64: 16, 1>}, {transform_indices = @transform_1, window_bounds = array<i64: 16, 32>}, {transform_indices = @transform_2, window_bounds = array<i64: 8, 128>}]} {
    %c0_i32 = arith.constant 0 : i32
    %0 = arith.cmpi eq, %arg1, %c0_i32 : i32
    %1 = arith.extui %0 : i1 to i32
    %c0_i32_0 = arith.constant 0 : i32
    %2 = arith.cmpi ne, %1, %c0_i32_0 : i32
    scf.if %2 {
      %cst_15 = arith.constant 0.000000e+00 : f32
      %37 = vector.broadcast %cst_15 : f32 to vector<16x1xf32>
      %c0_16 = arith.constant 0 : index
      %c0_17 = arith.constant 0 : index
      %38 = vector.load %arg5[%c0_16, %c0_17] : memref<16x1xf32, #tpu.memory_space<vmem>>, vector<16x1xf32>
      tpu.vector_store %arg5[%c0_16, %c0_17], %37 {strides = array<i32>} : memref<16x1xf32, #tpu.memory_space<vmem>>, vector<16x1xf32>,
    } else {
    }
    %c0 = arith.constant 0 : index
    %c0_1 = arith.constant 0 : index
    %3 = vector.load %arg3[%c0, %c0_1] : memref<16x32xf32, #tpu.memory_space<vmem>>, vector<16x32xf32>
    %c0_2 = arith.constant 0 : index
    %c0_3 = arith.constant 0 : index
    %4 = vector.load %arg2[%c0_2, %c0_3] : memref<16x1xi32, #tpu.memory_space<vmem>>, vector<16x1xi32>
    %c1_i32 = arith.constant 1 : i32
    %5 = arith.muli %arg0, %c1_i32 : i32
    %6 = arith.addi %5, %arg1 : i32
    %c16_i32 = arith.constant 16 : i32
    %7 = arith.muli %6, %c16_i32 : i32
    %8 = tpu.iota {dimensions = array<i32: 0>} : vector<16x1xi32>
    %9 = vector.broadcast %7 : i32 to vector<16x1xi32>
    %10 = arith.addi %9, %8 : vector<16x1xi32>
    %c16_i32_4 = arith.constant 16 : i32
    %11 = vector.broadcast %c16_i32_4 : i32 to vector<16x1xi32>
    %12 = arith.cmpi slt, %10, %11 : vector<16x1xi32>
    %cst = arith.constant dense<0xFF800000> : vector<16xf32>
    %13 = vector.multi_reduction <maximumf>, %3, %cst [1] : vector<16x32xf32> to vector<16xf32>
    %14 = vector.shape_cast %13 : vector<16xf32> to vector<16x1xf32>
    %15 = vector.broadcast %14 : vector<16x1xf32> to vector<16x32xf32>
    %16 = arith.subf %3, %15 : vector<16x32xf32>
    %17 = math.exp %16 : vector<16x32xf32>
    %cst_5 = arith.constant dense<0.000000e+00> : vector<16xf32>
    %18 = vector.multi_reduction <add>, %17, %cst_5 [1] : vector<16x32xf32> to vector<16xf32>
    %19 = vector.shape_cast %18 : vector<16xf32> to vector<16x1xf32>
    %20 = math.log %19 : vector<16x1xf32>
    %21 = tpu.iota {dimensions = array<i32: 1>} : vector<16x32xi32>
    %22 = vector.broadcast %4 : vector<16x1xi32> to vector<16x32xi32>
    %23 = arith.cmpi eq, %21, %22 : vector<16x32xi32>
    %cst_6 = arith.constant 0.000000e+00 : f32
    %24 = vector.broadcast %cst_6 : f32 to vector<16x32xf32>
    %25 = arith.select %23, %16, %24 : vector<16x32xi1>, vector<16x32xf32>
    %cst_7 = arith.constant dense<0.000000e+00> : vector<16xf32>
    %26 = vector.multi_reduction <add>, %25, %cst_7 [1] : vector<16x32xf32> to vector<16xf32>
    %27 = vector.shape_cast %26 : vector<16xf32> to vector<16x1xf32>
    %28 = arith.subf %20, %27 : vector<16x1xf32>
    %c0_8 = arith.constant 0 : index
    %c0_9 = arith.constant 0 : index
    %29 = vector.load %arg5[%c0_8, %c0_9] : memref<16x1xf32, #tpu.memory_space<vmem>>, vector<16x1xf32>
    %cst_10 = arith.constant 0.000000e+00 : f32
    %30 = vector.broadcast %cst_10 : f32 to vector<16x1xf32>
    %31 = arith.select %12, %28, %30 : vector<16x1xi1>, vector<16x1xf32>
    %32 = arith.addf %29, %31 : vector<16x1xf32>
    %c0_11 = arith.constant 0 : index
    %c0_12 = arith.constant 0 : index
    %33 = vector.load %arg5[%c0_11, %c0_12] : memref<16x1xf32, #tpu.memory_space<vmem>>, vector<16x1xf32>
    tpu.vector_store %arg5[%c0_11, %c0_12], %32 {strides = array<i32>} : memref<16x1xf32, #tpu.memory_space<vmem>>, vector<16x1xf32>,
    %c0_i32_13 = arith.constant 0 : i32
    %34 = arith.cmpi eq, %arg1, %c0_i32_13 : i32
    %35 = arith.extui %34 : i1 to i32
    %c0_i32_14 = arith.constant 0 : i32
    %36 = arith.cmpi ne, %35, %c0_i32_14 : i32
    scf.if %36 {
      %c0_15 = arith.constant 0 : index
      %c0_16 = arith.constant 0 : index
      %37 = vector.load %arg5[%c0_15, %c0_16] : memref<16x1xf32, #tpu.memory_space<vmem>>, vector<16x1xf32>
      %38 = vector.shape_cast %37 : vector<16x1xf32> to vector<1x16x1xf32>
      %cst_17 = arith.constant dense<0.000000e+00> : vector<1xf32>
      %39 = vector.multi_reduction <add>, %38, %cst_17 [1, 2] : vector<1x16x1xf32> to vector<1xf32>
      %40 = vector.shape_cast %39 : vector<1xf32> to vector<1x1x1xf32>
      %41 = vector.extract %40[0, 0, 0] : f32 from vector<1x1x1xf32>
      %42 = vector.broadcast %41 : f32 to vector<8x128xf32>
      %c0_18 = arith.constant 0 : index
      %c0_19 = arith.constant 0 : index
      %43 = vector.load %arg4[%c0_18, %c0_19] : memref<8x128xf32, #tpu.memory_space<vmem>>, vector<8x128xf32>
      tpu.vector_store %arg4[%c0_18, %c0_19], %42 {strides = array<i32>} : memref<8x128xf32, #tpu.memory_space<vmem>>, vector<8x128xf32>,
    } else {
    }
    return
  }
  func.func @transform_0(%arg0: i32, %arg1: i32) -> (i32, i32) {
    %c1_i32 = arith.constant 1 : i32
    %0 = arith.muli %arg0, %c1_i32 : i32
    %1 = arith.addi %0, %arg1 : i32
    %c0_i32 = arith.constant 0 : i32
    %2 = arith.minsi %1, %c0_i32 : i32
    %c0_i32_0 = arith.constant 0 : i32
    %c0_i32_1 = arith.constant 0 : i32
    return %2, %c0_i32_0 : i32, i32
  }
  func.func @transform_1(%arg0: i32, %arg1: i32) -> (i32, i32) {
    %c1_i32 = arith.constant 1 : i32
    %0 = arith.muli %arg0, %c1_i32 : i32
    %1 = arith.addi %0, %arg1 : i32
    %c0_i32 = arith.constant 0 : i32
    %2 = arith.minsi %1, %c0_i32 : i32
    %c0_i32_0 = arith.constant 0 : i32
    %c0_i32_1 = arith.constant 0 : i32
    return %2, %c0_i32_0 : i32, i32
  }
  func.func @transform_2(%arg0: i32, %arg1: i32) -> (i32, i32) {
    %c0_i32 = arith.constant 0 : i32
    %c0_i32_0 = arith.constant 0 : i32
    return %arg0, %c0_i32 : i32, i32
  }
}

</mosaic_0001>

<bundles_post_ra>
// kernel: focal_loss.1
= control target key start
LH: loop header
LB: loop body
LE: loop exit
PB: predicated region body
PF: predicated region fallthrough
CT: control target
= control target key end

     0   :  { %vm96_vm0 = vcmask 261120   ;;  %v197_v2 = vmov 0   ;;  %v119_v12 = vlaneseq  ;;  %vm79_vm3 = vcmask 7168   ;;  %s241_s1 = inlined_call_operand.vmem [shape: f32[16,32], index: 1, kind: input, shape index: {}]   ;;  %s242_s0 = inlined_call_operand.vmem [shape: s32[16,1], index: 0, kind: input, shape index: {}]   ;;  %s243_s2 = inlined_call_operand.vmem [shape: f32[8,128], index: 2, kind: output, shape index: {}]  }
   0x1   :  { %v82_v0 = vld [vmem:[%s241_s1] sm:$0xff]  ;;  %v83_v1 = vld [vmem:[%s241_s1 + $0x8] sm:$0xff]  ;;  %187 = vset.pattern.permute.xlu1 %v197_v2  ;;  %188 = vset.pattern.permute.xlu0 %v197_v2  ;;  %v198_v25 = vmov 0.0  }
   0x2   :  { %v84_v3 = vld [vmem:[%s242_s0] sm:$0xff]  ;;  %v97_v4 = vsel %vm96_vm0, %v82_v0, -inf  ;;  %v85_v5 = vld [vmem:[%s242_s0 + $0x8] sm:$0xff]  ;;  %v100_v6 = vsel %vm96_vm0, %v83_v1, -inf  ;;  %v120_v15 = vand.u32 127, %v119_v12  ;;  %80 = vst.msk [vmem:[#allocation2] sm:$0xff] %vm79_vm3, %v198_v25 }
   0x3   :  { %122 = vperm.xlu1 %187, %v84_v3   ;;  %98 = vmax.xlane.f32.xlu0 %v97_v4  ;;  %81 = vst.msk [vmem:[#allocation2 + $0x8] sm:$0xff] %vm79_vm3, %v198_v25 }
   0x7   :  { %125 = vperm.xlu1 %187, %v85_v5   ;;  %101 = vmax.xlane.f32.xlu0 %v100_v6 }
   0x9   :  { %v139_v31 = vld [vmem:[#allocation2] sm:$0xff] }
   0xa   :  { %v140_v36 = vld [vmem:[#allocation2 + $0x8] sm:$0xff] }
  0x82   :  { %v123_v14 = vpop.permute.xlu1 %122 }
  0x83   :  { %vm127_vm1 = vcmp.eq.s32.totalorder %v120_v15, %v123_v14 }
  0x86   :  { %v126_v17 = vpop.permute.xlu1 %125 }
  0x87   :  { %vm128_vm2 = vcmp.eq.s32.totalorder %v120_v15, %v126_v17 }
  0x90   :  { %v99_v7 = vpop.xlane.xlu0 %98 }
  0x91   :  { %v103_v8 = vsub.f32 %v82_v0, %v99_v7 }
  0x93   :  { %v105_v9 = vmul.f32 1.442695, %v103_v8  ;;  %v129_v19 = vsel %vm127_vm1, %v103_v8, 0.0 }
  0x94   :  { %v102_v10 = vpop.xlane.xlu0 %101  ;;  %v131_v22 = vsel %vm96_vm0, %v129_v19, 0.0 }
  0x95   :  { %189 = vpow2.f32 %v105_v9  ;;  %v104_v11 = vsub.f32 %v83_v1, %v102_v10 }
  0x97   :  { %v107_v13 = vmul.f32 1.442695, %v104_v11  ;;  %v130_v23 = vsel %vm128_vm2, %v104_v11, 0.0 }
  0x98   :  { %v134_v24 = vsel %vm96_vm0, %v130_v23, 0.0 }
  0x99   :  { %191 = vpow2.f32 %v107_v13 }
  0x9f   :  { %v190_v16 = vpop.eup %189 }
  0xa0   :  { %v109_v18 = vsel %vm96_vm0, %v190_v16, 0.0 }
  0xa1   :  { %110 = vadd.xlane.f32.xlu0 %v109_v18 }
  0xa3   :  { %v192_v20 = vpop.eup %191 }
  0xa4   :  { %v112_v21 = vsel %vm96_vm0, %v192_v20, 0.0 }
  0xa5   :  { %113 = vadd.xlane.f32.xlu1 %v112_v21  ;;  %132 = vadd.xlane.f32.xlu0 %v131_v22 }
  0xa9   :  { %135 = vadd.xlane.f32.xlu0 %v134_v24 }
 0x12e   :  { %v111_v26 = vpop.xlane.xlu0 %110 }
 0x12f   :  { %193 = vlog2.f32 %v111_v26 }
 0x132   :  { %v114_v27 = vpop.xlane.xlu1 %113  ;;  %v133_v29 = vpop.xlane.xlu0 %132 }
 0x133   :  { %195 = vlog2.f32 %v114_v27 }
 0x136   :  { %v136_v37 = vpop.xlane.xlu0 %135 }
 0x139   :  { %v194_v28 = vpop.eup %193 }
 0x13a   :  { %v116_v30 = vmul.f32 0.6931472, %v194_v28 }
 0x13c   :  { %v137_v32 = vsub.f32 %v116_v30, %v133_v29 }
 0x13d   :  { %v196_v33 = vpop.eup %195 }
 0x13e   :  { %v143_v34 = vadd.f32 %v139_v31, %v137_v32  ;;  %v118_v35 = vmul.f32 0.6931472, %v196_v33 }
 0x140   :  { %146 = vst.msk [vmem:[#allocation2] sm:$0xff] %vm79_vm3, %v143_v34  ;;  %v138_v38 = vsub.f32 %v118_v35, %v136_v37 }
 0x142   :  { %v144_v39 = vadd.f32 %v140_v36, %v138_v38 }
 0x144   :  { %147 = vst.msk [vmem:[#allocation2 + $0x8] sm:$0xff] %vm79_vm3, %v144_v39 }
 0x147   :  { %v151_v40 = vld [vmem:[#allocation2] sm:$0xff] }
 0x148   :  { %v153_v42 = vsel %vm79_vm3, %v151_v40, 0.0 }
 0x14b   :  { %v152_v41 = vld [vmem:[#allocation2 + $0x8] sm:$0xff] }
 0x14c   :  { %v154_v43 = vsel %vm79_vm3, %v152_v41, 0.0 }
 0x14d   :  { %v155_v44 = vadd.f32 %v154_v43, %v153_v42 }
 0x14f   :  { %156 = vadd.xlane.f32.xlu0 %v155_v44 }
 0x1dc   :  { %v157_v45 = vpop.xlane.xlu0 %156 }
 0x1dd   :  { %v158_v46 = vrot.slane %v157_v45, 4 }
 0x1df   :  { %v159_v47 = vadd.f32 %v158_v46, %v157_v45 }
 0x1e1   :  { %v160_v48 = vrot.slane %v159_v47, 2 }
 0x1e3   :  { %v161_v49 = vadd.f32 %v160_v48, %v159_v47 }
 0x1e5   :  { %v162_v50 = vrot.slane %v161_v49, 1 }
 0x1e7   :  { %v163_v51 = vadd.f32 %v162_v50, %v161_v49 }
 0x1e9   :  { %183 = vpush %v163_v51 }
 0x21a   :  { %s184_s0 = spop %183 }
 0x21b   :  { %v165_v52 = vstv %s184_s0 }
 0x21c   :  { %166 = vst [vmem:[%s243_s2] sm:$0xff] %v165_v52 }

</bundles_post_ra>
